<compile_context>
chip_gen: v7x
topology: tpu7x:2x2x1
jax: 0.10.0
libtpu: 0.0.40
codegen_flags: <defaults>
</compile_context>

<pallas_src>
import jax
import jax.numpy as jnp
from jax.experimental import pallas as pl
from jax.experimental.pallas import tpu as pltpu


def gpt_forward_kernel(ids_ref,      # [Npad] int32 token ids (SMEM, scalar prefetch)
                       tgt_ref,      # [tm, 1] int32 targets
                       emb_ref,      # [V, E]  f32 embedding table (resident)
                       wT_ref,       # [E, tv] bf16 lm_head weight tile
                       logits_ref,   # [tm, tv] f32 logits tile (out)
                       nll_ref,      # [tm, 1]  f32 per-token NLL (out, revisited over j)
                       x_ref,        # [tm, E]  f32 scratch: gathered embedding rows
                       m_ref,        # [tm, 1]  f32 scratch: running max
                       l_ref,        # [tm, 1]  f32 scratch: running sum(exp)
                       t_ref):       # [tm, 1]  f32 scratch: target-logit accumulator
    i = pl.program_id(0)             # row-tile index
    j = pl.program_id(1)             # vocab-tile index
    tm = x_ref.shape[0]
    tv = logits_ref.shape[1]

    # --- first vocab step: gather embedding rows + init online-LSE state ------
    @pl.when(j == 0)
    def _init():
        base = i * tm

        def gather_row(r, carry):
            tok = ids_ref[base + r]                       # scalar from SMEM
            x_ref[pl.ds(r, 1), :] = emb_ref[pl.ds(tok, 1), :]
            return carry

        jax.lax.fori_loop(0, tm, gather_row, 0)
        m_ref[...] = jnp.full_like(m_ref, -jnp.inf)
        l_ref[...] = jnp.zeros_like(l_ref)
        t_ref[...] = jnp.zeros_like(t_ref)

    # --- lm_head projection for this vocab tile (bf16 MXU, f32 accumulate) ----
    logits = jnp.dot(x_ref[...].astype(jnp.bfloat16), wT_ref[...],
                     preferred_element_type=jnp.float32)          # [tm, tv]
    logits_ref[...] = logits

    # --- online logsumexp across vocab tiles ----------------------------------
    m_prev = m_ref[...]
    m_new = jnp.maximum(m_prev, jnp.max(logits, axis=-1, keepdims=True))
    alpha = jnp.exp(m_prev - m_new)                               # 0 on first tile
    l_ref[...] = alpha * l_ref[...] + jnp.sum(jnp.exp(logits - m_new),
                                              axis=-1, keepdims=True)
    m_ref[...] = m_new

    # --- accumulate the target logit (target lies in exactly one vocab tile) --
    lane = jax.lax.broadcasted_iota(jnp.int32, (tm, tv), 1) + j * tv
    t_ref[...] += jnp.sum(jnp.where(lane == tgt_ref[...], logits, 0.0),
                          axis=-1, keepdims=True)

    # --- last vocab step: per-token NLL ----------------------------------------
    @pl.when(j == pl.num_programs(1) - 1)
    def _finalize():
        nll_ref[...] = (m_ref[...] + jnp.log(l_ref[...])) - t_ref[...]


def _round_up(x, m):
    return (x + m - 1) // m * m


def gpt_forward(idx, targets, emb_table, lm_head_w, *, tm=256, tv=512):
    """Minimalist GPT forward.

    idx, targets : [B, T] int token ids
    emb_table    : [V, E] float (nn.Embedding weight)
    lm_head_w    : [V, E] float (nn.Linear weight, torch layout)
    Returns (logits [B, T, V] float32, scalar mean cross-entropy loss).
    """
    B, T = idx.shape
    V, E = emb_table.shape
    N = B * T

    # Tile sizes. Row tile: big enough to feed the MXU (256 on v6e/v7x, 128 on
    # v5e); clamp to problem size. Vocab tile: lane-multiple divisor of V.
    tm = max(8, min(tm, _round_up(N, 8)))
    tm = _round_up(tm, 8)
    Npad = _round_up(N, tm)
    tv = min(tv, V)
    if tv % 128 != 0 or V % tv != 0:
        tv = V                       # fall back to a single vocab tile

    # Operand prep.
    idx_flat = idx.reshape(-1).astype(jnp.int32)
    tgt_flat = targets.reshape(-1).astype(jnp.int32)
    if Npad != N:
        idx_flat = jnp.pad(idx_flat, (0, Npad - N))
        tgt_flat = jnp.pad(tgt_flat, (0, Npad - N))
    tgt_col = tgt_flat.reshape(Npad, 1)

    emb = emb_table.astype(jnp.float32)      # f32 for robust in-kernel row gather
    wT = lm_head_w.T.astype(jnp.bfloat16)    # [E, V] bf16 weight stream

    grid = (Npad // tm, V // tv)

    logits_pad, nll_pad = pl.pallas_call(
        gpt_forward_kernel,
        out_shape=(
            jax.ShapeDtypeStruct((Npad, V), jnp.float32),
            jax.ShapeDtypeStruct((Npad, 1), jnp.float32),
        ),
        grid_spec=pltpu.PrefetchScalarGridSpec(
            num_scalar_prefetch=1,                                 # token ids -> SMEM
            grid=grid,
            in_specs=[
                pl.BlockSpec((tm, 1), lambda i, j, ids: (i, 0)),   # targets
                pl.BlockSpec((V, E), lambda i, j, ids: (0, 0)),    # embedding table
                pl.BlockSpec((E, tv), lambda i, j, ids: (0, j)),   # lm_head W^T tile
            ],
            out_specs=[
                pl.BlockSpec((tm, tv), lambda i, j, ids: (i, j)),  # logits tile
                pl.BlockSpec((tm, 1), lambda i, j, ids: (i, 0)),   # per-token nll
            ],
            scratch_shapes=[
                pltpu.VMEM((tm, E), jnp.float32),   # gathered embedding rows
                pltpu.VMEM((tm, 1), jnp.float32),   # running max m
                pltpu.VMEM((tm, 1), jnp.float32),   # running sum l
                pltpu.VMEM((tm, 1), jnp.float32),   # target-logit accumulator
            ],
        ),
        compiler_params=pltpu.CompilerParams(
            dimension_semantics=("parallel", "arbitrary")),
    )(idx_flat, tgt_col, emb, wT)

    logits = logits_pad[:N].reshape(B, T, V)
    loss = jnp.sum(nll_pad[:N, 0]) / N
    return logits, loss


if __name__ == "__main__":
    # Small GPT config: vocab=256, n_embd=64 (n_layer / n_head / dropout are unused
    # by this minimalist forward), batch=2, seq=8.
    V, E = 256, 64
    B, T = 2, 8

    key = jax.random.PRNGKey(0)
    k_emb, k_w, k_idx, k_tgt = jax.random.split(key, 4)

    # nn.Embedding default init: N(0,1); nn.Linear weight: U(-1/sqrt(in), 1/sqrt(in))
    emb_table = jax.random.normal(k_emb, (V, E), dtype=jnp.float32)
    bound = 1.0 / float(E) ** 0.5
    lm_head_w = jax.random.uniform(k_w, (V, E), minval=-bound, maxval=bound,
                                   dtype=jnp.float32)

    idx = jax.random.randint(k_idx, (B, T), 0, V, dtype=jnp.int32)
    targets = jax.random.randint(k_tgt, (B, T), 0, V, dtype=jnp.int32)

    # Small tiles here so the test exercises both multi-row-tile and
    # multi-vocab-tile (online logsumexp) paths; production defaults are tm=256, tv=512.
    logits, loss = gpt_forward(idx, targets, emb_table, lm_head_w, tm=8, tv=128)
    jax.block_until_ready((logits, loss))

    # Pure-JAX reference with the same bf16 weight/activation quantization.
    x = emb_table[idx]                                              # [B, T, E]
    x_q = x.astype(jnp.bfloat16).astype(jnp.float32)
    w_q = lm_head_w.astype(jnp.bfloat16).astype(jnp.float32)
    ref_logits = jnp.einsum("bte,ve->btv", x_q, w_q)
    lv = ref_logits.reshape(B * T, V)
    tgt_v = targets.reshape(B * T)
    ref_loss = jnp.mean(
        jax.nn.logsumexp(lv, axis=-1) - lv[jnp.arange(B * T), tgt_v])

    assert logits.shape == (B, T, V)
    assert jnp.allclose(logits, ref_logits, atol=2e-2, rtol=2e-2), \
        float(jnp.max(jnp.abs(logits - ref_logits)))
    assert jnp.allclose(loss, ref_loss, atol=2e-2, rtol=2e-2), \
        (float(loss), float(ref_loss))

    print("KERNEL_OK")
</pallas_src>

<mosaic_0001>
module attributes {stable_mosaic.version = 11 : i64} {
  func.func @gpt_forward_kernel(%arg0: i32, %arg1: i32, %arg2: memref<16xi32, #tpu.memory_space<smem>>, %arg3: memref<8x1xi32, #tpu.memory_space<vmem>>, %arg4: memref<256x64xf32, #tpu.memory_space<vmem>>, %arg5: memref<64x128xbf16, #tpu.memory_space<vmem>>, %arg6: memref<8x128xf32, #tpu.memory_space<vmem>>, %arg7: memref<8x1xf32, #tpu.memory_space<vmem>>, %arg8: memref<8x64xf32, #tpu.memory_space<vmem>>, %arg9: memref<8x1xf32, #tpu.memory_space<vmem>>, %arg10: memref<8x1xf32, #tpu.memory_space<vmem>>, %arg11: memref<8x1xf32, #tpu.memory_space<vmem>>) attributes {dimension_semantics = [#tpu.dimension_semantics<parallel>, #tpu.dimension_semantics<arbitrary>], iteration_bounds = array<i64: 2, 2>, scalar_prefetch = 1 : i64, scratch_operands = 4 : i64, tpu.core_type = #tpu.core_type<tc>, window_params = [{transform_indices = @transform_0, window_bounds = array<i64: 8, 1>}, {pipeline_mode = #tpu.pipeline_mode<synchronous>, transform_indices = @transform_1, window_bounds = array<i64: 256, 64>}, {transform_indices = @transform_2, window_bounds = array<i64: 64, 128>}, {transform_indices = @transform_3, window_bounds = array<i64: 8, 128>}, {transform_indices = @transform_4, window_bounds = array<i64: 8, 1>}]} {
    %c0_i32 = arith.constant 0 : i32
    %0 = arith.cmpi eq, %arg1, %c0_i32 : i32
    %1 = arith.extui %0 : i1 to i32
    %c0_i32_0 = arith.constant 0 : i32
    %2 = arith.cmpi ne, %1, %c0_i32_0 : i32
    scf.if %2 {
      %c8_i32 = arith.constant 8 : i32
      %41 = arith.muli %arg0, %c8_i32 : i32
      %c0_i32_25 = arith.constant 0 : i32
      %c8_i32_26 = arith.constant 8 : i32
      %42 = arith.addi %c0_i32_25, %c8_i32_26 : i32
      %c1_i32_27 = arith.constant 1 : i32
      scf.for %arg12 = %c0_i32_25 to %42 step %c1_i32_27  : i32 {
        %49 = arith.addi %41, %arg12 : i32
        %50 = arith.index_cast %49 : i32 to index
        %51 = memref.load %arg2[%50] : memref<16xi32, #tpu.memory_space<smem>>
        %52 = arith.index_cast %51 : i32 to index
        %c0_38 = arith.constant 0 : index
        %53 = vector.load %arg4[%52, %c0_38] : memref<256x64xf32, #tpu.memory_space<vmem>>, vector<1x64xf32>
        %54 = arith.index_cast %arg12 : i32 to index
        %c0_39 = arith.constant 0 : index
        %55 = vector.load %arg8[%54, %c0_39] : memref<8x64xf32, #tpu.memory_space<vmem>>, vector<1x64xf32>
        tpu.vector_store %arg8[%54, %c0_39], %53 {strides = array<i32>} : memref<8x64xf32, #tpu.memory_space<vmem>>, vector<1x64xf32>,
      }
      %c8_i32_28 = arith.constant 8 : i32
      %cst_29 = arith.constant 0xFF800000 : f32
      %43 = vector.broadcast %cst_29 : f32 to vector<8x1xf32>
      %c0_30 = arith.constant 0 : index
      %c0_31 = arith.constant 0 : index
      %44 = vector.load %arg9[%c0_30, %c0_31] : memref<8x1xf32, #tpu.memory_space<vmem>>, vector<8x1xf32>
      tpu.vector_store %arg9[%c0_30, %c0_31], %43 {strides = array<i32>} : memref<8x1xf32, #tpu.memory_space<vmem>>, vector<8x1xf32>,
      %cst_32 = arith.constant 0.000000e+00 : f32
      %45 = vector.broadcast %cst_32 : f32 to vector<8x1xf32>
      %c0_33 = arith.constant 0 : index
      %c0_34 = arith.constant 0 : index
      %46 = vector.load %arg10[%c0_33, %c0_34] : memref<8x1xf32, #tpu.memory_space<vmem>>, vector<8x1xf32>
      tpu.vector_store %arg10[%c0_33, %c0_34], %45 {strides = array<i32>} : memref<8x1xf32, #tpu.memory_space<vmem>>, vector<8x1xf32>,
      %cst_35 = arith.constant 0.000000e+00 : f32
      %47 = vector.broadcast %cst_35 : f32 to vector<8x1xf32>
      %c0_36 = arith.constant 0 : index
      %c0_37 = arith.constant 0 : index
      %48 = vector.load %arg11[%c0_36, %c0_37] : memref<8x1xf32, #tpu.memory_space<vmem>>, vector<8x1xf32>
      tpu.vector_store %arg11[%c0_36, %c0_37], %47 {strides = array<i32>} : memref<8x1xf32, #tpu.memory_space<vmem>>, vector<8x1xf32>,
    } else {
    }
    %c0 = arith.constant 0 : index
    %c0_1 = arith.constant 0 : index
    %3 = vector.load %arg8[%c0, %c0_1] : memref<8x64xf32, #tpu.memory_space<vmem>>, vector<8x64xf32>
    %4 = arith.truncf %3 : vector<8x64xf32> to vector<8x64xbf16>
    %c0_2 = arith.constant 0 : index
    %c0_3 = arith.constant 0 : index
    %5 = vector.load %arg5[%c0_2, %c0_3] : memref<64x128xbf16, #tpu.memory_space<vmem>>, vector<64x128xbf16>
    %cst = arith.constant dense<0.000000e+00> : vector<8x128xf32>
    %6 = tpu.matmul %4, %5, %cst {dimension_numbers = #tpu.dot_dimension_numbers<[1], [0], [0], [1], [0, 0, 1, 1], [], []>} : vector<8x64xbf16>, vector<64x128xbf16>, vector<8x128xf32> -> vector<8x128xf32>
    %c0_4 = arith.constant 0 : index
    %c0_5 = arith.constant 0 : index
    %7 = vector.load %arg6[%c0_4, %c0_5] : memref<8x128xf32, #tpu.memory_space<vmem>>, vector<8x128xf32>
    tpu.vector_store %arg6[%c0_4, %c0_5], %6 {strides = array<i32>} : memref<8x128xf32, #tpu.memory_space<vmem>>, vector<8x128xf32>,
    %c0_6 = arith.constant 0 : index
    %c0_7 = arith.constant 0 : index
    %8 = vector.load %arg9[%c0_6, %c0_7] : memref<8x1xf32, #tpu.memory_space<vmem>>, vector<8x1xf32>
    %cst_8 = arith.constant dense<0xFF800000> : vector<8xf32>
    %9 = vector.multi_reduction <maximumf>, %6, %cst_8 [1] : vector<8x128xf32> to vector<8xf32>
    %10 = vector.shape_cast %9 : vector<8xf32> to vector<8x1xf32>
    %11 = arith.maximumf %8, %10 : vector<8x1xf32>
    %12 = arith.subf %8, %11 : vector<8x1xf32>
    %13 = math.exp %12 : vector<8x1xf32>
    %c0_9 = arith.constant 0 : index
    %c0_10 = arith.constant 0 : index
    %14 = vector.load %arg10[%c0_9, %c0_10] : memref<8x1xf32, #tpu.memory_space<vmem>>, vector<8x1xf32>
    %15 = arith.mulf %13, %14 : vector<8x1xf32>
    %16 = vector.broadcast %11 : vector<8x1xf32> to vector<8x128xf32>
    %17 = arith.subf %6, %16 : vector<8x128xf32>
    %18 = math.exp %17 : vector<8x128xf32>
    %cst_11 = arith.constant dense<0.000000e+00> : vector<8xf32>
    %19 = vector.multi_reduction <add>, %18, %cst_11 [1] : vector<8x128xf32> to vector<8xf32>
    %20 = vector.shape_cast %19 : vector<8xf32> to vector<8x1xf32>
    %21 = arith.addf %15, %20 : vector<8x1xf32>
    %c0_12 = arith.constant 0 : index
    %c0_13 = arith.constant 0 : index
    %22 = vector.load %arg10[%c0_12, %c0_13] : memref<8x1xf32, #tpu.memory_space<vmem>>, vector<8x1xf32>
    tpu.vector_store %arg10[%c0_12, %c0_13], %21 {strides = array<i32>} : memref<8x1xf32, #tpu.memory_space<vmem>>, vector<8x1xf32>,
    %c0_14 = arith.constant 0 : index
    %c0_15 = arith.constant 0 : index
    %23 = vector.load %arg9[%c0_14, %c0_15] : memref<8x1xf32, #tpu.memory_space<vmem>>, vector<8x1xf32>
    tpu.vector_store %arg9[%c0_14, %c0_15], %11 {strides = array<i32>} : memref<8x1xf32, #tpu.memory_space<vmem>>, vector<8x1xf32>,
    %24 = tpu.iota {dimensions = array<i32: 1>} : vector<8x128xi32>
    %c128_i32 = arith.constant 128 : i32
    %25 = arith.muli %arg1, %c128_i32 : i32
    %26 = vector.broadcast %25 : i32 to vector<8x128xi32>
    %27 = arith.addi %24, %26 : vector<8x128xi32>
    %c0_16 = arith.constant 0 : index
    %c0_17 = arith.constant 0 : index
    %28 = vector.load %arg11[%c0_16, %c0_17] : memref<8x1xf32, #tpu.memory_space<vmem>>, vector<8x1xf32>
    %c0_18 = arith.constant 0 : index
    %c0_19 = arith.constant 0 : index
    %29 = vector.load %arg3[%c0_18, %c0_19] : memref<8x1xi32, #tpu.memory_space<vmem>>, vector<8x1xi32>
    %30 = vector.broadcast %29 : vector<8x1xi32> to vector<8x128xi32>
    %31 = arith.cmpi eq, %27, %30 : vector<8x128xi32>
    %cst_20 = arith.constant 0.000000e+00 : f32
    %32 = vector.broadcast %cst_20 : f32 to vector<8x128xf32>
    %33 = arith.select %31, %6, %32 : vector<8x128xi1>, vector<8x128xf32>
    %cst_21 = arith.constant dense<0.000000e+00> : vector<8xf32>
    %34 = vector.multi_reduction <add>, %33, %cst_21 [1] : vector<8x128xf32> to vector<8xf32>
    %35 = vector.shape_cast %34 : vector<8xf32> to vector<8x1xf32>
    %36 = arith.addf %28, %35 : vector<8x1xf32>
    %c0_22 = arith.constant 0 : index
    %c0_23 = arith.constant 0 : index
    %37 = vector.load %arg11[%c0_22, %c0_23] : memref<8x1xf32, #tpu.memory_space<vmem>>, vector<8x1xf32>
    tpu.vector_store %arg11[%c0_22, %c0_23], %36 {strides = array<i32>} : memref<8x1xf32, #tpu.memory_space<vmem>>, vector<8x1xf32>,
    %c1_i32 = arith.constant 1 : i32
    %38 = arith.cmpi eq, %arg1, %c1_i32 : i32
    %39 = arith.extui %38 : i1 to i32
    %c0_i32_24 = arith.constant 0 : i32
    %40 = arith.cmpi ne, %39, %c0_i32_24 : i32
    scf.if %40 {
      %c0_25 = arith.constant 0 : index
      %c0_26 = arith.constant 0 : index
      %41 = vector.load %arg9[%c0_25, %c0_26] : memref<8x1xf32, #tpu.memory_space<vmem>>, vector<8x1xf32>
      %c0_27 = arith.constant 0 : index
      %c0_28 = arith.constant 0 : index
      %42 = vector.load %arg10[%c0_27, %c0_28] : memref<8x1xf32, #tpu.memory_space<vmem>>, vector<8x1xf32>
      %43 = math.log %42 : vector<8x1xf32>
      %44 = arith.addf %41, %43 : vector<8x1xf32>
      %c0_29 = arith.constant 0 : index
      %c0_30 = arith.constant 0 : index
      %45 = vector.load %arg11[%c0_29, %c0_30] : memref<8x1xf32, #tpu.memory_space<vmem>>, vector<8x1xf32>
      %46 = arith.subf %44, %45 : vector<8x1xf32>
      %c0_31 = arith.constant 0 : index
      %c0_32 = arith.constant 0 : index
      %47 = vector.load %arg7[%c0_31, %c0_32] : memref<8x1xf32, #tpu.memory_space<vmem>>, vector<8x1xf32>
      tpu.vector_store %arg7[%c0_31, %c0_32], %46 {strides = array<i32>} : memref<8x1xf32, #tpu.memory_space<vmem>>, vector<8x1xf32>,
    } else {
    }
    return
  }
  func.func @transform_0(%arg0: i32, %arg1: i32, %arg2: memref<16xi32, #tpu.memory_space<smem>>) -> (i32, i32) {
    %c0_i32 = arith.constant 0 : i32
    %c0_i32_0 = arith.constant 0 : i32
    return %arg0, %c0_i32 : i32, i32
  }
  func.func @transform_1(%arg0: i32, %arg1: i32, %arg2: memref<16xi32, #tpu.memory_space<smem>>) -> (i32, i32) {
    %c0_i32 = arith.constant 0 : i32
    %c0_i32_0 = arith.constant 0 : i32
    %c0_i32_1 = arith.constant 0 : i32
    return %c0_i32, %c0_i32_0 : i32, i32
  }
  func.func @transform_2(%arg0: i32, %arg1: i32, %arg2: memref<16xi32, #tpu.memory_space<smem>>) -> (i32, i32) {
    %c0_i32 = arith.constant 0 : i32
    %c0_i32_0 = arith.constant 0 : i32
    return %c0_i32, %arg1 : i32, i32
  }
  func.func @transform_3(%arg0: i32, %arg1: i32, %arg2: memref<16xi32, #tpu.memory_space<smem>>) -> (i32, i32) {
    %c0_i32 = arith.constant 0 : i32
    return %arg0, %arg1 : i32, i32
  }
  func.func @transform_4(%arg0: i32, %arg1: i32, %arg2: memref<16xi32, #tpu.memory_space<smem>>) -> (i32, i32) {
    %c0_i32 = arith.constant 0 : i32
    %c0_i32_0 = arith.constant 0 : i32
    return %arg0, %c0_i32 : i32, i32
  }
}

</mosaic_0001>

<bundles_post_ra>
// kernel: tpu_custom_call.1
= control target key start
LH: loop header
LB: loop body
LE: loop exit
PB: predicated region body
PF: predicated region fallthrough
CT: control target
= control target key end

     0   :  { %s1141_s0 = inlined_call_operand.vmem [shape: s32[16], index: 0, kind: input, shape index: {}]   ;;  %s1142_s1 = inlined_call_operand.vmem [shape: s32[16,1], index: 1, kind: input, shape index: {}]   ;;  %s1143_s2 = inlined_call_operand.vmem [shape: f32[256,64], index: 2, kind: input, shape index: {}]   ;;  %s1144_s3 = inlined_call_operand.vmem [shape: bf16[64,256], index: 3, kind: input, shape index: {}]   ;;  %s1145_s4 = inlined_call_operand.hbm [shape: f32[16,256], index: 4, kind: output, shape index: {0}]   ;;  %s1146_s5 = inlined_call_operand.vmem [shape: f32[16,1], index: 5, kind: output, shape index: {1}]  }
   0x1   :  { %1150 = sst [smem:[#allocation15_spill]] %s1142_s1  ;;  %s11_s20 = sshll.u32 %s1141_s0, 4  ;;  %s12_s20 = int_to_ptr.vmem [resolvable:$true] %s11_s20 }
   0x2   :  { %1151 = sst [smem:[#allocation16_spill]] %s1144_s3  ;;  %s766_s21 = scalar_lea.vmem %s12_s20, 16 }
   0x3   :  { %p767_p0 = scmp.ne.s32.totalorder %s12_s20, %s766_s21  ;;  %p771_p1 = scmp.lt.s32.totalorder %s12_s20, %s12_s20 }
   0x4   :  { %p772_p2 = scmp.lt.s32.totalorder %s766_s21, %s766_s21 }
   0x6   :  { %p773_p3 = por %p772_p2, %p771_p1 }
   0x8   :  { %p774_p4 = pnand %p773_p3, %p767_p0 }
   0xa   :  { %777 = shalt.err (!%p774_p4)  }
   0xb   :  { %s900_s22 = smov [#allocation7]  }
   0xc   :  { %14 = dma.vmem_to_smem %s12_s20, 16, %s900_s22, [#allocation6] }
   0xd   :  { %850 = dma.done.wait [#allocation6], 16 }
   0xe   :  { %851 = vsyncadd [#allocation6], 4294967280 }
   0xf   :  { %16 = sfence }
  0x10   :  { %17 = vsyncpa [#allocation10], 0 }
  0x11   :  { %19 = vsyncpa [#allocation10 + $0x1], 0  ;;  %s940_s23 = smov 0   ;;  %s942_s24 = smov 0  }
  0x12   :  { %s944_s0 = smov 0   ;;  %s946_s25 = smov 0  }
  0x13   :  { %s948_s26 = smov 0   ;;  %s950_s27 = smov 0  }
  0x14   :  { %s952_s28 = smov 0   ;;  %s954_s29 = smov 0  }
  0x15   :  { %s956_s30 = smov 0   ;;  %s958_s6 = smov 0  }
  0x16 LB: > { %s611_s7 = sadd.s32 4294967295, %s894_s6   ;;  %s612_s8 = sadd.s32 4294967294, %s894_s6   ;;  %s894_s6 = sphi %s958_s6, %s25_s6   ;;  %s890_s30 = sphi %s956_s30, %s1170_s30   ;;  %s886_s29 = sphi %s954_s29, %s1169_s29   ;;  %s882_s28 = sphi %s952_s28, %s1168_s28   ;;  %s878_s27 = sphi %s950_s27, %s1167_s27   ;;  %s874_s26 = sphi %s948_s26, %s1166_s26   ;;  %s870_s25 = sphi %s946_s25, %s1165_s25   ;;  %s866_s0 = sphi %s944_s0, %s1164_s0   ;;  %s862_s24 = sphi %s942_s24, %s1163_s24   ;;  %s858_s23 = sphi %s940_s23, %s1162_s23  }
  0x17   : > { %s34_s9 = sadd.s32 1, %s886_s29  ;;  %s37_s10 = sadd.s32 1, %s890_s30 }
  0x18   : > { %p35_p5 = scmp.ge.s32.totalorder %s34_s9, 2  ;;  %s91_s11 = sadd.s32 1, %s874_s26 }
  0x19   : > { %p98_p6 = scmp.ne.s32.totalorder %s874_s26, %s870_s25  ;;  %p99_p7 = scmp.eq.s32.totalorder %s894_s6, 0 }
  0x1a   : > { %s1172_s9 = smov (%p35_p5, %s34_s9), 0  ;;  %s1174_s10 = smov (!%p35_p5, %s37_s10), %s890_s30 }
  0x1b   : > { %1152 = sst [smem:[#allocation13_spill]] %s1172_s9  ;;  %s88_s12 = ssub.s32 %s886_s29, %s1172_s9 }
  0x1c   : > { %p1003_p8 = por %p99_p7, %p98_p6  ;;  %p39_p9 = scmp.ge.s32.totalorder %s1174_s10, 2 }
  0x1d   : > { %p89_p10 = scmp.eq.s32.totalorder %s88_s12, 0  ;;  %s119_s14 = sadd.s32 1, %s866_s0 }
  0x1e   : > { %p129_p11 = scmp.ne.s32.totalorder %s866_s0, %s862_s24  ;;  %s1176_s10 = smov (%p39_p9, %s1174_s10), 0 }
  0x1f   : > { %1154 = sst [smem:[#allocation14_spill]] %s1176_s10  ;;  %s114_s16 = ssub.s32 %s890_s30, %s1176_s10 }
  0x20   : > { %s1013_s15 = scalar_select %p89_p10, %s874_s26, %s91_s11  }
  0x21   : > { %p130_p12 = scmp.eq.s32.totalorder %s611_s7, 3  ;;  %s116_s17 = sor.u32 %s114_s16, %s88_s12 }
  0x22   : > { %p135_p13 = scmp.ne.s32.totalorder %s862_s24, %s858_s23  ;;  %p117_p0 = scmp.eq.s32.totalorder %s116_s17, 0 }
  0x23   : > { %p1019_p1 = por %p130_p12, %p129_p11  ;;  %p136_p2 = scmp.eq.s32.totalorder %s612_s8, 3 }
  0x24   : > { %s1024_s19 = scalar_select %p117_p0, %s866_s0, %s119_s14  }
  0x25   : > { %p1026_p3 = por %p136_p2, %p135_p13  ;;  %p614_p4 = scmp.ge.s32.totalorder %s894_s6, 4 }
  0x27   : > { %181 = sbr.rel (%p614_p4) target bundleno = 61 (0x3d), region = 20 }
  0x2e   : > { %191 = sbr.rel (!%p1003_p8) target bundleno = 61 (0x3d), region = 28  ;;  %s193_s21 = sand.u32 (%p1003_p8), 1, %s874_s26  }
  0x2f   : > { %s616_s22 = sshll.u32 (%p1003_p8), %s886_s29, 2  ;;  %s615_s7 = sshll.u32 (%p1003_p8), %s193_s21, 5 }
  0x30   : > { %s1157_s3 = sld [smem:[#allocation16_spill]] (%p1003_p8)  ;;  %s195_s14 = scalar_lea.vmem (%p1003_p8), [#allocation8], %s615_s7 }
  0x36   : > { %s197_s8 = scalar_lea.vmem %s1157_s3, %s616_s22 }
  0x37   : > { %v213_v0 = vld [vmem:[%s197_s8] sm:$0xf]  ;;  %v215_v1 = vld [vmem:[%s197_s8 + $0x8] sm:$0xf]  ;;  %v217_v2 = vld [vmem:[%s197_s8 + $0x10] sm:$0xf] }
  0x38   : > { %214 = vst [vmem:[%s195_s14] sm:$0xf] %v213_v0  ;;  %216 = vst [vmem:[%s195_s14 + $0x4] sm:$0xf] %v215_v1  ;;  %v219_v3 = vld [vmem:[%s197_s8 + $0x18] sm:$0xf] }
  0x39   : > { %v221_v4 = vld [vmem:[%s197_s8 + $0x20] sm:$0xf]  ;;  %218 = vst [vmem:[%s195_s14 + $0x8] sm:$0xf] %v217_v2  ;;  %220 = vst [vmem:[%s195_s14 + $0xc] sm:$0xf] %v219_v3 }
  0x3a   : > { %222 = vst [vmem:[%s195_s14 + $0x10] sm:$0xf] %v221_v4  ;;  %v223_v5 = vld [vmem:[%s197_s8 + $0x28] sm:$0xf]  ;;  %v225_v6 = vld [vmem:[%s197_s8 + $0x30] sm:$0xf] }
  0x3b   : > { %v227_v7 = vld [vmem:[%s197_s8 + $0x38] sm:$0xf]  ;;  %224 = vst [vmem:[%s195_s14 + $0x14] sm:$0xf] %v223_v5  ;;  %226 = vst [vmem:[%s195_s14 + $0x18] sm:$0xf] %v225_v6 }
  0x3c   : > { %228 = vst [vmem:[%s195_s14 + $0x1c] sm:$0xf] %v227_v7 }
  0x3d PF: > { %p617_p5 = scmp.ge.s32.totalorder %s894_s6, 1  ;;  %p266_p6 = scmp.lt.s32.totalorder %s894_s6, 5 }
  0x3f   : > { %p267_p7 = pnand %p617_p5, %p266_p6 }
  0x40   : > { %s273_s13 = sand.u32 (!%p267_p7), 1, %s870_s25   ;;  %s1148_s16 = sand.u32 (!%p267_p7), 1, %s862_s24  }
  0x41   : > { %270 = sbr.rel (%p267_p7) target bundleno = 803 (0x323), region = 69  ;;  %s618_s17 = sshll.u32 (!%p267_p7), %s273_s13, 5 }
  0x42   : > { %s1044_s21 = sshll.u32 (!%p267_p7), %s1148_s16, 3  ;;  %p306_p8 = scmp.lt.s32.totalorder (!%p267_p7), %s882_s28, 1 }
  0x43   : > { %s1158_s1 = sld [smem:[#allocation15_spill]] (!%p267_p7)  ;;  %s1058_s25 = scalar_lea.vmem (!%p267_p7), [#allocation8], %s618_s17 }
  0x44   : > { %s299_s13 = scalar_lea.vmem (!%p267_p7), [#allocation9], %s1044_s21  ;;  %p622_p9 = scmp.ne.s32.totalorder (!%p267_p7), %s878_s27, 0 }
  0x48   : > { %s307_s22 = scalar_select %p306_p8, %s882_s28, 1 }
  0x49   : > { %318 = sbr.rel (%p622_p9) target bundleno = 91 (0x5b), region = 77  ;;  %s623_s16 = sshll.u32 (!%p622_p9), %s882_s28, 3 }
  0x4a   : > { %s620_s7 = sshll.u32 %s307_s22, 3  ;;  %s896_s9 = smov (!%p622_p9), 0  }
  0x4b   : > { %s1051_s8 = scalar_lea.vmem %s1158_s1, %s620_s7  ;;  %s1056_s10 = scalar_lea.vmem %s1146_s5, %s620_s7 }
  0x50 LB: >> { %s326_s22 = sadd.s32 %s898_s9, %s623_s16  ;;  %vm331_vm0 = vcmask 516096   ;;  %s330_s17 = scalar_lea.vmem [#allocation2], %s898_s9  ;;  %s898_s9 = sphi %s896_s9, %s325_s9  }
  0x51   : >> { %s327_s11 = sld [smem:[#allocation7 + %s326_s22]]  ;;  %s325_s9 = sadd.s32 1, %s898_s9  }
  0x52   : >> { %p322_p10 = scmp.ge.s32.totalorder %s325_s9, 8  }
  0x53   : > { %vm333_vm1 = vcmask (%p322_p10), 7168   ;;  %v901_v9 = vmov (%p322_p10), -inf   ;;  %v902_v10 = vmov (%p322_p10), 0.0  }
  0x54   : > { %324 = sbr.rel (!%p322_p10) target bundleno = 80 (0x50), region = 145  ;;  %334 = vst.msk [vmem:[#allocation3] sm:$0xff] (%p322_p10), %vm333_vm1, %v901_v9  ;;  %335 = vst.msk [vmem:[#allocation4] sm:$0xff] (%p322_p10), %vm333_vm1, %v902_v10 }
  0x55   : > { %336 = vst.msk [vmem:[#allocation5] sm:$0xff] (%p322_p10), %vm333_vm1, %v902_v10 }
  0x57   : >> { %s328_s3 = scalar_lea.vmem %s1143_s2, %s327_s11 }
  0x58   : >> { %v329_v8 = vld [vmem:[%s328_s3] sm:$0x1] }
  0x59   : >> { %332 = vst.msk [vmem:[%s330_s17] sm:$0x1] %vm331_vm0, %v329_v8 }
  0x5b PF: > { %v756_v11 = vld [vmem:[%s1058_s25] sm:$0xff]   ;;  %v903_v12 = vmov 0.0   ;;  %v757_v13 = vld [vmem:[%s1058_s25 + $0x8] sm:$0xff]   ;;  %vm904_vm2 = vmmov 0   ;;  %v905_v14 = vmov 0   ;;  %v758_v16 = vld [vmem:[%s1058_s25 + $0x10] sm:$0xff]   ;;  %v439_v31 = vlaneseq }
  0x5c   : > { %641 = vmatprep.subr.bf16.mxu0 %v903_v12  ;;  %649 = vmatprep.mubr.msk.bf16.mxu0 %vm904_vm2, %v903_v12  ;;  %v445_v15 = vld [vmem:[%s1051_s8] sm:$0xff]  ;;  %v759_v17 = vld [vmem:[%s1058_s25 + $0x18] sm:$0xff]   ;;  %vm371_vm3 = vcmask 523264   ;;  %v416_v24 = vld [vmem:[#allocation3] sm:$0xff]  ;;  %vm436_vm4 = vcmask 7168   ;;  %s629_s1 = sshll.u32 %s878_s27, 7 }
  0x5d   : > { %642 = vmatpush3.bf16.msra.mxu0 %v756_v11  ;;  %755 = vset.pattern.permute.xlu1 %v905_v14  ;;  %v440_v32 = vand.u32 127, %v439_v31  ;;  %v442_v33 = vstv %s629_s1  ;;  %v423_v40 = vld [vmem:[#allocation4] sm:$0xff]  ;;  %v444_v44 = vld [vmem:[#allocation5] sm:$0xff]  ;;  %p630_p11 = scmp.ne.s32.totalorder %s878_s27, 1 }
  0x5e   : > { %643 = vmatprep.subr.bf16.mxu0 %v903_v12  ;;  %754 = vset.pattern.permute.xlu0 %v905_v14 }
  0x5f   : > { %447 = vperm.xlu1 %755, %v445_v15   ;;  %v443_v34 = vadd.s32 %v442_v33, %v440_v32 }
  0x60   : > { %v337_v18 = vld [vmem:[#allocation2] sm:$0xff] }
  0x61   : > { %644 = vmatpush3.bf16.msra.mxu0 %v757_v13  ;;  %v338_v19 = vpack.c.bf16 %v337_v18, %v337_v18 }
  0x62   : > { %645 = vmatprep.subr.bf16.mxu0 %v903_v12 }
  0x65   : > { %646 = vmatpush3.bf16.msra.mxu0 %v758_v16 }
  0x66   : > { %647 = vmatprep.subr.bf16.mxu0 %v903_v12 }
  0x69   : > { %648 = vmatpush3.bf16.msra.mxu0 %v759_v17 }
  0x6c   : > { %650 = vmatmul.mubr.msk.bf16.vlgmr.msra.gmra.mrb[0].mxu0 %vm371_vm3, %v338_v19 }
  0xde   : > { %v448_v35 = vpop.permute.xlu1 %447 }
  0xdf   : > { %vm449_vm5 = vcmp.eq.s32.totalorder %v443_v34, %v448_v35 }
 0x13f   : > { %v409_v20 = vpop.f32.mrb[0].mxu0 }
 0x140   : > { %415 = vst [vmem:[%s299_s13] sm:$0xff] %v409_v20  ;;  %417 = vmax.xlane.f32.xlu0 %v409_v20  ;;  %v651_v21 = vpop.f32.mrb[1].mxu0  ;;  %v450_v37 = vsel %vm449_vm5, %v409_v20, 0.0 }
 0x141   : > { %v412_v22 = vpop.f32.mrb[2].mxu0 }
 0x142   : > { %v652_v23 = vpop.f32.mrb[3].mxu0 }
 0x1cd   : > { %v418_v25 = vpop.xlane.xlu0 %417 }
 0x1ce   : > { %v419_v26 = vmax.f32 %v416_v24, %v418_v25 }
 0x1d0   : > { %v420_v27 = vsub.f32 %v416_v24, %v419_v26  ;;  %438 = vst.msk [vmem:[#allocation3] sm:$0xff] %vm436_vm4, %v419_v26  ;;  %427 = vperm.xlu0 %754, %v419_v26  }
 0x1d2   : > { %v421_v38 = vmul.f32 1.442695, %v420_v27 }
 0x1d7   : > { %v459_v49 = vld [vmem:[#allocation3] sm:$0xff] (!%p630_p11) }
 0x24f   : > { %v428_v28 = vpop.permute.xlu0 %427 }
 0x250   : > { %v430_v29 = vsub.f32 %v409_v20, %v428_v28 }
 0x252   : > { %v431_v30 = vmul.f32 1.442695, %v430_v29 }
 0x254   : > { %760 = vpow2.f32 %v431_v30 }
 0x255   : > { %762 = vpow2.f32 %v421_v38 }
 0x25e   : > { %v761_v36 = vpop.eup %760 }
 0x25f   : > { %433 = vadd.xlane.f32.xlu1 %v761_v36  ;;  %v763_v39 = vpop.eup %762 }
 0x260   : > { %v424_v41 = vmul.f32 %v763_v39, %v423_v40 }
 0x263   : > { %451 = vadd.xlane.f32.xlu1 %v450_v37 }
 0x2ec   : > { %v434_v42 = vpop.xlane.xlu1 %433 }
 0x2ed   : > { %v435_v43 = vadd.f32 %v434_v42, %v424_v41  ;;  %458 = sbr.rel (%p630_p11) target bundleno = 777 (0x309), region = 88 }
 0x2ef   : > { %437 = vst.msk [vmem:[#allocation4] sm:$0xff] %vm436_vm4, %v435_v43 }
 0x2f0   : > { %v452_v45 = vpop.xlane.xlu1 %451 }
 0x2f1   : > { %v453_v46 = vadd.f32 %v452_v45, %v444_v44 }
 0x2f3   : > { %454 = vst.msk [vmem:[#allocation5] sm:$0xff] %vm436_vm4, %v453_v46 }
 0x2f6   : > { %v460_v47 = vld [vmem:[#allocation4] sm:$0xff] }
 0x2f7   : > { %764 = vlog2.f32 %v460_v47 }
 0x2fa   : > { %v464_v51 = vld [vmem:[#allocation5] sm:$0xff] }
 0x301   : > { %v765_v48 = vpop.eup %764 }
 0x302   : > { %v462_v50 = vmul.f32 0.6931472, %v765_v48 }
 0x304   : > { %v463_v52 = vadd.f32 %v462_v50, %v459_v49 }
 0x306   : > { %v465_v53 = vsub.f32 %v463_v52, %v464_v51 }
 0x308   : > { %466 = vst.msk [vmem:[%s1056_s10] sm:$0xff] %vm436_vm4, %v465_v53 }
 0x309 PF: > { %s632_s9 = sshll.u32 %s882_s28, 1  ;;  %s487_s7 = sshll.u32 %s299_s13, 4  ;;  %s1084_s7 = int_to_ptr.vmem [resolvable:$true] %s487_s7 }
 0x30a   : > { %s483_s16 = sadd.s32 %s878_s27, %s632_s9  ;;  %s1159_s22 = sand.u32 1, %s862_s24  }
 0x30b   : > { %s633_s8 = sshll.u32 %s483_s16, 7  ;;  %s468_s11 = scalar_lea.sflag [#allocation10], %s1159_s22 }
 0x30c   : > { %s485_s10 = scalar_lea.hbm %s1145_s4, %s633_s8  ;;  %s778_s12 = scalar_lea.vmem %s1084_s7, 128 }
 0x30d   : > { %p779_p12 = scmp.ne.s32.totalorder %s1084_s7, %s778_s12  ;;  %s906_s27 = smov [#allocation9]  }
 0x30e   : > { %s782_s28 = sshll.u32 %s906_s27, 4  ;;  %s783_s28 = int_to_ptr.vmem [resolvable:$false] %s782_s28 }
 0x30f   : > { %p780_p13 = pnand %p779_p12, %p1019_p1  ;;  %s784_s21 = scalar_lea.vmem %s783_s28, 256 }
 0x310   : > { %p785_p2 = scmp.lt.s32.totalorder %s1084_s7, %s783_s28  ;;  %p786_p4 = scmp.lt.s32.totalorder %s784_s21, %s778_s12 }
 0x311   : > { %p781_p0 = pneg %p780_p13 }
 0x312   : > { %p787_p5 = por %p786_p4, %p785_p2 }
 0x314   : > { %p788_p6 = pnand %p787_p5, %p781_p0 }
 0x316   : > { %791 = shalt.err (!%p788_p6)
}
 0x317   : > { %s792_s13 = scalar_lea.hbm %s485_s10, 128  ;;  %s796_s1 = scalar_lea.hbm %s1145_s4, 512 }
 0x318   : > { %p793_p7 = scmp.ne.s32.totalorder %s485_s10, %s792_s13  ;;  %p797_p10 = scmp.lt.u32.totalorder %s485_s10, %s1145_s4 }
 0x319   : > { %p798_p11 = scmp.lt.u32.totalorder %s796_s1, %s792_s13  ;;  %p800_p13 = scmp.lt.u32.totalorder %s792_s13, %s485_s10 }
 0x31a   : > { %p794_p8 = pnand %p793_p7, %p1019_p1 }
 0x31b   : > { %p799_p12 = por %p798_p11, %p797_p10 }
 0x31c   : > { %p795_p9 = pneg %p794_p8 }
 0x31d   : > { %p801_p2 = por %p800_p13, %p799_p12 }
 0x31f   : > { %p802_p0 = pnand %p801_p2, %p795_p9 }
 0x321   : > { %805 = shalt.err (!%p802_p0)
}
 0x322   : > { %653 = dma.vmem_to_hbm [thread:$0]  (%p1019_p1), %s1084_s7, 128, %s485_s10, %s468_s11  }
 0x323 PF: > { %p659_p4 = scmp.ge.s32.totalorder %s894_s6, 2  ;;  %s502_s8 = sand.u32 1, %s858_s23  }
 0x324   : > { %s503_s14 = scalar_lea.sflag [#allocation10], %s502_s8 }
 0x325   : > { %p656_p5 = pnand %p659_p4, %p1026_p3 }
 0x327   : > { %853 = dma.done.wait (!%p656_p5), %s503_s14, 128  }
 0x328   : > { %855 = vsyncadd (!%p656_p5), %s503_s14, 4294967168  ;;  %s25_s6 = sadd.s32 1, %s894_s6   ;;  %s1160_s18 = sld [smem:[#allocation13_spill]] }
 0x329   : > { %p22_p6 = scmp.ge.s32.totalorder %s25_s6, 6   ;;  %s1161_s7 = sld [smem:[#allocation14_spill]] }
 0x32a   : > { %s1162_s23 = smov %s862_s24  ;;  %s1163_s24 = smov %s866_s0 }
 0x32b   : > { %s1164_s0 = smov %s1024_s19  ;;  %s1165_s25 = smov %s874_s26 }
 0x32c   : > { %s1166_s26 = smov %s1013_s15  ;;  %s1167_s27 = smov %s886_s29 }
 0x32d   : > { %s1168_s28 = smov %s890_s30  ;;  %24 = sbr.rel (!%p22_p6) target bundleno = 22 (0x16), region = 156 }
 0x32e   : > { %s1169_s29 = smov %s1160_s18 }
 0x32f   : > { %s1170_s30 = smov %s1161_s7 }
 0x334   :  { %515 = vsyncpa [#allocation10], 1 }
 0x335   :  { %517 = vsyncpa [#allocation10 + $0x1], 1 }

</bundles_post_ra>
